<compile_context>
chip_gen: v7x
topology: tpu7x:2x2x1
jax: 0.10.0
libtpu: 0.0.40
codegen_flags: <defaults>
</compile_context>

<pallas_src>
import functools

import jax
import jax.numpy as jnp
from jax.experimental import pallas as pl
from jax.experimental.pallas import tpu as pltpu

H1 = 128
H2 = 32
OUT = 1


def _round_up(x, m):
    return ((x + m - 1) // m) * m


def _mlp_kernel(x_ref, w1_ref, b1_ref, w2_ref, b2_ref, w3_ref, b3_ref, o_ref,
                *, use_bf16):
    x = x_ref[...]
    w1 = w1_ref[...]
    if use_bf16:
        # bf16-native MXU path (v6e/v7x); accumulation stays in f32.
        x = x.astype(jnp.bfloat16)
        w1 = w1.astype(jnp.bfloat16)

    # lin1 + ReLU  (MXU, f32 accumulation)
    h1 = jnp.dot(x, w1, preferred_element_type=jnp.float32) + b1_ref[...]
    h1 = jnp.maximum(h1, 0.0)

    # lin2 + ReLU  (MXU)
    h2 = jnp.dot(h1, w2_ref[...], preferred_element_type=jnp.float32) + b2_ref[...]
    h2 = jnp.maximum(h2, 0.0)

    # lin3: (block_rows, 32) . (32,) done on the VPU/XLU (multiply + cross-lane
    # reduce) -> lane-dense (1, block_rows) output row.  b3 is an SMEM scalar.
    o = jnp.sum(h2 * w3_ref[...], axis=-1) + b3_ref[0]          # (block_rows,)
    o_ref[...] = o.reshape(1, -1).astype(o_ref.dtype)           # (1, block_rows)


@functools.partial(jax.jit, static_argnames=("block_n", "use_bf16"))
def mlp_forward(x, params, block_n=512, use_bf16=False):
    """x: [N, input_dims] float32.  params: dict (w1,b1,w2,b2,w3,b3)."""
    assert block_n % 8 == 0, "block_n must be a multiple of 8 (f32 sublane)"
    n, d = x.shape

    # Clamp the row tile for tiny batches; otherwise use block_n (prefer a
    # multiple of 128 so the output slab's lane dim takes unmasked stores).
    block_rows = min(block_n, _round_up(n, 8))
    num_tiles = pl.cdiv(n, block_rows)

    w1, b1, w2, b2, w3, b3 = (
        params["w1"], params["b1"], params["w2"],
        params["b2"], params["w3"], params["b3"],
    )

    kernel = functools.partial(_mlp_kernel, use_bf16=use_bf16)

    out_slab = pl.pallas_call(
        kernel,
        out_shape=jax.ShapeDtypeStruct((num_tiles, block_rows), jnp.float32),
        grid_spec=pltpu.PrefetchScalarGridSpec(
            num_scalar_prefetch=0,
            grid=(num_tiles,),
            in_specs=[
                pl.BlockSpec((block_rows, d), lambda i: (i, 0)),    # x row tile
                pl.BlockSpec((d, H1), lambda i: (0, 0)),            # W1^T (resident)
                pl.BlockSpec((1, H1), lambda i: (0, 0)),            # b1 row
                pl.BlockSpec((H1, H2), lambda i: (0, 0)),           # W2^T
                pl.BlockSpec((1, H2), lambda i: (0, 0)),            # b2 row
                pl.BlockSpec((1, H2), lambda i: (0, 0)),            # W3 as (1,32) row
                pl.BlockSpec(memory_space=pltpu.MemorySpace.SMEM),  # b3 scalar
            ],
            # Lane-dense output slab: one (1, block_rows) row per grid step.
            out_specs=pl.BlockSpec((1, block_rows), lambda i: (i, 0)),
        ),
        compiler_params=pltpu.CompilerParams(
            dimension_semantics=("parallel",),
        ),
    )(x, w1, b1, w2, b2, w3, b3)

    # Slab row i holds outputs for global rows [i*block_rows, (i+1)*block_rows).
    return out_slab.reshape(-1)[:n].reshape(n, OUT)


def init_params(key, input_dims):
    """Deterministic init mimicking nn.Linear's uniform(-1/sqrt(fan_in), +)."""
    ks = jax.random.split(key, 6)

    def lin(kw, kb, fan_in, fan_out):
        bound = 1.0 / jnp.sqrt(fan_in)
        w = jax.random.uniform(kw, (fan_in, fan_out), jnp.float32, -bound, bound)
        b = jax.random.uniform(kb, (1, fan_out), jnp.float32, -bound, bound)
        return w, b

    w1, b1 = lin(ks[0], ks[1], input_dims, H1)          # [in,128], [1,128]
    w2, b2 = lin(ks[2], ks[3], H1, H2)                  # [128,32], [1,32]
    bound3 = 1.0 / jnp.sqrt(H2)
    w3 = jax.random.uniform(ks[4], (1, H2), jnp.float32, -bound3, bound3)  # (1,32) row
    b3 = jax.random.uniform(ks[5], (1,), jnp.float32, -bound3, bound3)     # scalar
    return dict(w1=w1, b1=b1, w2=w2, b2=b2, w3=w3, b3=b3)


def mlp_reference(x, p):
    h1 = jnp.maximum(x @ p["w1"] + p["b1"], 0.0)
    h2 = jnp.maximum(h1 @ p["w2"] + p["b2"], 0.0)
    return jnp.sum(h2 * p["w3"], axis=-1, keepdims=True) + p["b3"]


if __name__ == "__main__":
    key = jax.random.PRNGKey(0)
    k_x, k_p, k_x2 = jax.random.split(key, 3)

    input_dims = 64
    params = init_params(k_p, input_dims)

    # Small test (single tile, clamped block).
    batch = 16
    x = jax.random.normal(k_x, (batch, input_dims), dtype=jnp.float32)
    out = mlp_forward(x, params)
    jax.block_until_ready(out)
    ref = mlp_reference(x, params)
    assert out.shape == (batch, 1), out.shape
    assert jnp.allclose(out, ref, atol=1e-5, rtol=1e-5), float(
        jnp.max(jnp.abs(out - ref)))

    # Multi-tile + ragged-last-tile path (exercises the lane-dense slab output).
    n2 = 300
    x2 = jax.random.normal(k_x2, (n2, input_dims), dtype=jnp.float32)
    out2 = mlp_forward(x2, params, block_n=128)
    jax.block_until_ready(out2)
    ref2 = mlp_reference(x2, params)
    assert out2.shape == (n2, 1), out2.shape
    assert jnp.allclose(out2, ref2, atol=1e-5, rtol=1e-5), float(
        jnp.max(jnp.abs(out2 - ref2)))

    print("KERNEL_OK")
</pallas_src>

<mosaic_0001>
module attributes {stable_mosaic.version = 11 : i64} {
  func.func @_mlp_kernel(%arg0: i32, %arg1: memref<16x64xf32, #tpu.memory_space<vmem>>, %arg2: memref<64x128xf32, #tpu.memory_space<vmem>>, %arg3: memref<1x128xf32, #tpu.memory_space<vmem>>, %arg4: memref<128x32xf32, #tpu.memory_space<vmem>>, %arg5: memref<1x32xf32, #tpu.memory_space<vmem>>, %arg6: memref<1x32xf32, #tpu.memory_space<vmem>>, %arg7: memref<1xf32, #tpu.memory_space<smem>>, %arg8: memref<1x16xf32, #tpu.memory_space<vmem>>) attributes {dimension_semantics = [#tpu.dimension_semantics<parallel>], iteration_bounds = array<i64: 1>, scalar_prefetch = 0 : i64, scratch_operands = 0 : i64, tpu.core_type = #tpu.core_type<tc>, window_params = [{transform_indices = @transform_0, window_bounds = array<i64: 16, 64>}, {pipeline_mode = #tpu.pipeline_mode<synchronous>, transform_indices = @transform_1, window_bounds = array<i64: 64, 128>}, {pipeline_mode = #tpu.pipeline_mode<synchronous>, transform_indices = @transform_2, window_bounds = array<i64: 1, 128>}, {pipeline_mode = #tpu.pipeline_mode<synchronous>, transform_indices = @transform_3, window_bounds = array<i64: 128, 32>}, {pipeline_mode = #tpu.pipeline_mode<synchronous>, transform_indices = @transform_4, window_bounds = array<i64: 1, 32>}, {pipeline_mode = #tpu.pipeline_mode<synchronous>, transform_indices = @transform_5, window_bounds = array<i64: 1, 32>}, {transform_indices = @transform_6, window_bounds = array<i64: 1>}, {transform_indices = @transform_7, window_bounds = array<i64: 1, 16>}]} {
    %c0 = arith.constant 0 : index
    %c0_0 = arith.constant 0 : index
    %0 = vector.load %arg1[%c0, %c0_0] : memref<16x64xf32, #tpu.memory_space<vmem>>, vector<16x64xf32>
    %c0_1 = arith.constant 0 : index
    %c0_2 = arith.constant 0 : index
    %1 = vector.load %arg2[%c0_1, %c0_2] : memref<64x128xf32, #tpu.memory_space<vmem>>, vector<64x128xf32>
    %cst = arith.constant dense<0.000000e+00> : vector<16x128xf32>
    %2 = tpu.matmul %0, %1, %cst {dimension_numbers = #tpu.dot_dimension_numbers<[1], [0], [0], [1], [0, 0, 1, 1], [], []>} : vector<16x64xf32>, vector<64x128xf32>, vector<16x128xf32> -> vector<16x128xf32>
    %c0_3 = arith.constant 0 : index
    %c0_4 = arith.constant 0 : index
    %3 = vector.load %arg3[%c0_3, %c0_4] : memref<1x128xf32, #tpu.memory_space<vmem>>, vector<1x128xf32>
    %4 = vector.broadcast %3 : vector<1x128xf32> to vector<16x128xf32>
    %5 = arith.addf %2, %4 : vector<16x128xf32>
    %cst_5 = arith.constant 0.000000e+00 : f32
    %6 = vector.broadcast %cst_5 : f32 to vector<16x128xf32>
    %7 = arith.maximumf %5, %6 : vector<16x128xf32>
    %c0_6 = arith.constant 0 : index
    %c0_7 = arith.constant 0 : index
    %8 = vector.load %arg4[%c0_6, %c0_7] : memref<128x32xf32, #tpu.memory_space<vmem>>, vector<128x32xf32>
    %cst_8 = arith.constant dense<0.000000e+00> : vector<16x32xf32>
    %9 = tpu.matmul %7, %8, %cst_8 {dimension_numbers = #tpu.dot_dimension_numbers<[1], [0], [0], [1], [0, 0, 1, 1], [], []>} : vector<16x128xf32>, vector<128x32xf32>, vector<16x32xf32> -> vector<16x32xf32>
    %c0_9 = arith.constant 0 : index
    %c0_10 = arith.constant 0 : index
    %10 = vector.load %arg5[%c0_9, %c0_10] : memref<1x32xf32, #tpu.memory_space<vmem>>, vector<1x32xf32>
    %11 = vector.broadcast %10 : vector<1x32xf32> to vector<16x32xf32>
    %12 = arith.addf %9, %11 : vector<16x32xf32>
    %cst_11 = arith.constant 0.000000e+00 : f32
    %13 = vector.broadcast %cst_11 : f32 to vector<16x32xf32>
    %14 = arith.maximumf %12, %13 : vector<16x32xf32>
    %c0_12 = arith.constant 0 : index
    %c0_13 = arith.constant 0 : index
    %15 = vector.load %arg6[%c0_12, %c0_13] : memref<1x32xf32, #tpu.memory_space<vmem>>, vector<1x32xf32>
    %16 = vector.broadcast %15 : vector<1x32xf32> to vector<16x32xf32>
    %17 = arith.mulf %14, %16 : vector<16x32xf32>
    %cst_14 = arith.constant dense<0.000000e+00> : vector<16xf32>
    %18 = vector.multi_reduction <add>, %17, %cst_14 [1] : vector<16x32xf32> to vector<16xf32>
    %c0_15 = arith.constant 0 : index
    %19 = memref.load %arg7[%c0_15] : memref<1xf32, #tpu.memory_space<smem>>
    %20 = vector.broadcast %19 : f32 to vector<16xf32>
    %21 = arith.addf %18, %20 : vector<16xf32>
    %22 = vector.shape_cast %21 : vector<16xf32> to vector<1x16xf32>
    %c0_16 = arith.constant 0 : index
    %c0_17 = arith.constant 0 : index
    %23 = vector.load %arg8[%c0_16, %c0_17] : memref<1x16xf32, #tpu.memory_space<vmem>>, vector<1x16xf32>
    tpu.vector_store %arg8[%c0_16, %c0_17], %22 {strides = array<i32>} : memref<1x16xf32, #tpu.memory_space<vmem>>, vector<1x16xf32>,
    return
  }
  func.func @transform_0(%arg0: i32) -> (i32, i32) {
    %c0_i32 = arith.constant 0 : i32
    %c0_i32_0 = arith.constant 0 : i32
    return %arg0, %c0_i32 : i32, i32
  }
  func.func @transform_1(%arg0: i32) -> (i32, i32) {
    %c0_i32 = arith.constant 0 : i32
    %c0_i32_0 = arith.constant 0 : i32
    %c0_i32_1 = arith.constant 0 : i32
    return %c0_i32, %c0_i32_0 : i32, i32
  }
  func.func @transform_2(%arg0: i32) -> (i32, i32) {
    %c0_i32 = arith.constant 0 : i32
    %c0_i32_0 = arith.constant 0 : i32
    %c0_i32_1 = arith.constant 0 : i32
    return %c0_i32, %c0_i32_0 : i32, i32
  }
  func.func @transform_3(%arg0: i32) -> (i32, i32) {
    %c0_i32 = arith.constant 0 : i32
    %c0_i32_0 = arith.constant 0 : i32
    %c0_i32_1 = arith.constant 0 : i32
    return %c0_i32, %c0_i32_0 : i32, i32
  }
  func.func @transform_4(%arg0: i32) -> (i32, i32) {
    %c0_i32 = arith.constant 0 : i32
    %c0_i32_0 = arith.constant 0 : i32
    %c0_i32_1 = arith.constant 0 : i32
    return %c0_i32, %c0_i32_0 : i32, i32
  }
  func.func @transform_5(%arg0: i32) -> (i32, i32) {
    %c0_i32 = arith.constant 0 : i32
    %c0_i32_0 = arith.constant 0 : i32
    %c0_i32_1 = arith.constant 0 : i32
    return %c0_i32, %c0_i32_0 : i32, i32
  }
  func.func @transform_6(%arg0: i32) -> i32 {
    %c0_i32 = arith.constant 0 : i32
    %c0_i32_0 = arith.constant 0 : i32
    return %c0_i32 : i32
  }
  func.func @transform_7(%arg0: i32) -> (i32, i32) {
    %c0_i32 = arith.constant 0 : i32
    %c0_i32_0 = arith.constant 0 : i32
    return %arg0, %c0_i32 : i32, i32
  }
}

</mosaic_0001>

<bundles_post_ra>
// kernel: mlp_forward.1
= control target key start
LH: loop header
LB: loop body
LE: loop exit
PB: predicated region body
PF: predicated region fallthrough
CT: control target
= control target key end

     0   :  { %vm45_vm0 = vcmask 523264   ;;  %s586_s0 = inlined_call_operand.vmem [shape: f32[16,64], index: 0, kind: input, shape index: {}]   ;;  %s587_s1 = inlined_call_operand.vmem [shape: f32[64,128], index: 1, kind: input, shape index: {}]   ;;  %s588_s2 = inlined_call_operand.vmem [shape: f32[1,128], index: 2, kind: input, shape index: {}]   ;;  %s589_s3 = inlined_call_operand.vmem [shape: f32[128,32], index: 3, kind: input, shape index: {}]   ;;  %s590_s4 = inlined_call_operand.vmem [shape: f32[1,32], index: 4, kind: input, shape index: {}]   ;;  %s591_s5 = inlined_call_operand.vmem [shape: f32[1,32], index: 5, kind: input, shape index: {}]   ;;  %s592_s6 = inlined_call_operand.<no memory space> [shape: f32[1], index: 6, kind: input, shape index: {}]   ;;  %s593_s7 = inlined_call_operand.hbm [shape: f32[1,16], index: 7, kind: output, shape index: {}]  }
   0x1   :  { %v30_v0 = vld [vmem:[%s587_s1] sm:$0xff]  ;;  %v31_v1 = vld [vmem:[%s587_s1 + $0x8] sm:$0xff]  ;;  %v32_v2 = vld [vmem:[%s587_s1 + $0x10] sm:$0xff] }
   0x2   :  { %v368_v3 = vpack.c.bf16 %v31_v1, %v30_v0  ;;  %v33_v4 = vld [vmem:[%s587_s1 + $0x18] sm:$0xff]  ;;  %v34_v6 = vld [vmem:[%s587_s1 + $0x20] sm:$0xff]  ;;  %v35_v7 = vld [vmem:[%s587_s1 + $0x28] sm:$0xff] }
   0x3   :  { %v372_v5 = vpack.c.bf16 %v33_v4, %v32_v2  ;;  %v28_v8 = vld [vmem:[%s586_s0] sm:$0xff]  ;;  %v130_v10 = vld [vmem:[%s589_s3 + $0x8] sm:$0xff]  ;;  %v131_v12 = vld [vmem:[%s589_s3 + $0x10] sm:$0xff]  ;;  %v376_v14 = vpack.c.bf16 %v35_v7, %v34_v6 }
   0x4   :  { %369 = vmatprep.subr.bf16.mxu0 %v368_v3  ;;  %330 = vmatprep.mubr.msk.f32.mxu0 %vm45_vm0, %v28_v8  ;;  %v129_v9 = vld [vmem:[%s589_s3] sm:$0xff]  ;;  %v132_v13 = vld [vmem:[%s589_s3 + $0x18] sm:$0xff]  ;;  %v134_v17 = vld [vmem:[%s589_s3 + $0x28] sm:$0xff] }
   0x5   :  { %371 = vmatpush3.bf16.msra.mxu0 %v368_v3  ;;  %v384_v11 = vpack.c.bf16 %v130_v10, %v129_v9  ;;  %v388_v15 = vpack.c.bf16 %v132_v13, %v131_v12  ;;  %v133_v16 = vld [vmem:[%s589_s3 + $0x20] sm:$0xff]  ;;  %v36_v18 = vld [vmem:[%s587_s1 + $0x30] sm:$0xff]  ;;  %v37_v19 = vld [vmem:[%s587_s1 + $0x38] sm:$0xff] }
   0x6   :  { %373 = vmatprep.subr.bf16.mxu0 %v372_v5  ;;  %v392_v20 = vpack.c.bf16 %v134_v17, %v133_v16 }
   0x7   :  { %385 = vmatprep.subr.bf16.mxu1 %v384_v11 }
   0x8   :  { %387 = vmatpush3.bf16.msra.mxu1 %v384_v11 }
   0x9   :  { %375 = vmatpush3.bf16.msra.mxu0 %v372_v5  ;;  %389 = vmatprep.subr.bf16.mxu1 %v388_v15 }
   0xa   :  { %13 = vsyncpa [#allocation4], 0  ;;  %377 = vmatprep.subr.bf16.mxu0 %v376_v14  ;;  %v380_v21 = vpack.c.bf16 %v37_v19, %v36_v18  ;;  %v135_v22 = vld [vmem:[%s589_s3 + $0x30] sm:$0xff]  ;;  %v136_v23 = vld [vmem:[%s589_s3 + $0x38] sm:$0xff]  ;;  %vm238_vm1 = vcmask 261120   ;;  %v251_v57 = vlaneseq  ;;  %v246_v61 = vstv %s592_s6 }
   0xb   :  { %v396_v24 = vpack.c.bf16 %v136_v23, %v135_v22  ;;  %v137_v25 = vld [vmem:[%s589_s3 + $0x40] sm:$0xff]  ;;  %v138_v26 = vld [vmem:[%s589_s3 + $0x48] sm:$0xff]  ;;  %v139_v29 = vld [vmem:[%s589_s3 + $0x50] sm:$0xff]  ;;  %vm262_vm2 = vcmask 130112   ;;  %vm265_vm3 = vcmask 122880  }
   0xc   :  { %391 = vmatpush3.bf16.msra.mxu1 %v388_v15  ;;  %v29_v27 = vld [vmem:[%s586_s0 + $0x8] sm:$0xff]  ;;  %v400_v28 = vpack.c.bf16 %v138_v26, %v137_v25  ;;  %v140_v30 = vld [vmem:[%s589_s3 + $0x58] sm:$0xff]  ;;  %v141_v32 = vld [vmem:[%s589_s3 + $0x60] sm:$0xff]  ;;  %v252_v58 = vand.u32 127, %v251_v57  ;;  %v254_v59 = vshrl.u32 %v251_v57, 7 }
   0xd   :  { %379 = vmatpush3.bf16.msra.mxu0 %v376_v14  ;;  %393 = vmatprep.subr.bf16.mxu1 %v392_v20  ;;  %v404_v31 = vpack.c.bf16 %v140_v30, %v139_v29  ;;  %v142_v33 = vld [vmem:[%s589_s3 + $0x68] sm:$0xff]  ;;  %v143_v35 = vld [vmem:[%s589_s3 + $0x70] sm:$0xff]  ;;  %v144_v36 = vld [vmem:[%s589_s3 + $0x78] sm:$0xff] }
   0xe   :  { %381 = vmatprep.subr.bf16.mxu0 %v380_v21  ;;  %v408_v34 = vpack.c.bf16 %v142_v33, %v141_v32  ;;  %v412_v37 = vpack.c.bf16 %v144_v36, %v143_v35  ;;  %v281_v38 = vld [vmem:[%s588_s2] ss:$0 sm:$0xff]  ;;  %v257_v60 = vadd.s32 4294967288, %v252_v58  ;;  %v255_v63 = vsub.s32 %v252_v58, %v254_v59 }
   0xf   :  { %v284_v45 = vld [vmem:[%s590_s4] ss:$0 sm:$0xff] }
  0x10   :  { %395 = vmatpush3.bf16.msra.mxu1 %v392_v20  ;;  %v285_v50 = vld [vmem:[%s591_s5] ss:$0 sm:$0xff]  ;;  %v260_v1 = vsub.s32 %v257_v60, %v254_v59  ;;  %s441_s5 = smov [#allocation3]  }
  0x11   :  { %383 = vmatpush3.bf16.msra.mxu0 %v380_v21  ;;  %397 = vmatprep.subr.bf16.mxu1 %v396_v24  ;;  %s273_s10 = sshll.u32 %s441_s5, 4  ;;  %s274_s10 = int_to_ptr.vmem [resolvable:$true] %s273_s10 }
  0x12   :  { %s417_s11 = scalar_lea.vmem %s274_s10, 16  ;;  %s421_s1 = scalar_lea.vmem %s274_s10, 32 }
  0x13   :  { %p418_p0 = scmp.ne.s32.totalorder %s274_s10, %s417_s11  ;;  %p422_p1 = scmp.lt.s32.totalorder %s274_s10, %s274_s10 }
  0x14   :  { %331 = vmatmul.mubr.msk.f32.vlgmr.msra.gmra.mrb[0].mxu0 %vm45_vm0, %v29_v27  ;;  %399 = vmatpush3.bf16.msra.mxu1 %v396_v24  ;;  %p423_p2 = scmp.lt.s32.totalorder %s421_s1, %s417_s11 }
  0x15   :  { %401 = vmatprep.subr.bf16.mxu1 %v400_v28 }
  0x16   :  { %p424_p3 = por %p423_p2, %p422_p1 }
  0x18   :  { %403 = vmatpush3.bf16.msra.mxu1 %v400_v28  ;;  %p425_p4 = pnand %p424_p3, %p418_p0 }
  0x19   :  { %405 = vmatprep.subr.bf16.mxu1 %v404_v31 }
  0x1c   :  { %407 = vmatpush3.bf16.msra.mxu1 %v404_v31 }
  0x1d   :  { %409 = vmatprep.subr.bf16.mxu1 %v408_v34 }
  0x20   :  { %411 = vmatpush3.bf16.msra.mxu1 %v408_v34 }
  0x21   :  { %413 = vmatprep.subr.bf16.mxu1 %v412_v37 }
  0x24   :  { %415 = vmatpush3.bf16.msra.mxu1 %v412_v37 }
  0xe7   :  { %v332_v39 = vpop.f32.mrb[0].mxu0 }
  0xe8   :  { %v124_v40 = vadd.f32 %v332_v39, %v281_v38  ;;  %v118_v41 = vpop.f32.mrb[1].mxu0 }
  0xe9   :  { %v119_v42 = vadd.f32 %v281_v38, %v118_v41 }
  0xea   :  { %v128_v44 = vmax.f32 %v124_v40, 0.0 }
  0xeb   :  { %v127_v43 = vmax.f32 %v119_v42, 0.0 }
  0xed   :  { %365 = vmatprep.mubr.f32.mxu1 %v127_v43 }
  0xee   :  { %366 = vmatmul.mubr.f32.vlgmr.msra.gmra.mrb[0].mxu1 %v128_v44 }
 0x1c1   :  { %v367_v46 = vpop.f32.mrb[0].mxu1 }
 0x1c2   :  { %v224_v47 = vadd.f32 %v367_v46, %v284_v45  ;;  %v218_v48 = vpop.f32.mrb[1].mxu1 }
 0x1c3   :  { %v219_v49 = vadd.f32 %v284_v45, %v218_v48 }
 0x1c4   :  { %v228_v51 = vmax.f32 %v224_v47, 0.0 }
 0x1c5   :  { %v227_v52 = vmax.f32 %v219_v49, 0.0 }
 0x1c6   :  { %v237_v55 = vmul.f32 %v285_v50, %v228_v51 }
 0x1c7   :  { %v236_v53 = vmul.f32 %v285_v50, %v227_v52 }
 0x1c8   :  { %v242_v56 = vsel %vm238_vm1, %v237_v55, 0.0 }
 0x1c9   :  { %v239_v54 = vsel %vm238_vm1, %v236_v53, 0.0 }
 0x1ca   :  { %240 = vadd.xlane.f32.xlu0 %v239_v54 }
 0x1ce   :  { %243 = vadd.xlane.f32.xlu0 %v242_v56 }
 0x257   :  { %v241_v62 = vpop.xlane.xlu0 %240 }
 0x258   :  { %v247_v0 = vadd.f32 %v246_v61, %v241_v62 }
 0x25a   :  { %v256_v4 = vrot.slane %v247_v0, %v255_v63 }
 0x25b   :  { %v244_v2 = vpop.xlane.xlu0 %243 }
 0x25c   :  { %v248_v3 = vadd.f32 %v246_v61, %v244_v2 }
 0x25e   :  { %v261_v5 = vrot.slane %v248_v3, %v260_v1 }
 0x260   :  { %v263_v6 = vsel %vm262_vm2, %v261_v5, %v256_v4 }
 0x261   :  { %266 = vst.msk [vmem:[#allocation3] sm:$0x1] %vm265_vm3, %v263_v6 }
 0x262   :  { %428 = shalt.err (!%p425_p4)
}
 0x263   :  { %s429_s13 = scalar_lea.hbm %s593_s7, 16 }
 0x264   :  { %p430_p5 = scmp.ne.s32.totalorder %s593_s7, %s429_s13  ;;  %p433_p6 = scmp.lt.u32.totalorder %s429_s13, %s593_s7 }
 0x266   :  { %p435_p7 = pnand %p433_p6, %p430_p5 }
 0x268   :  { %438 = shalt.err (!%p435_p7)
}
 0x269   :  { %276 = dma.vmem_to_hbm [thread:$0]  %s274_s10, 16, %s593_s7, [#allocation4]  }
 0x26a   :  { %439 = dma.done.wait [#allocation4], 16  }
 0x26b   :  { %440 = vsyncadd [#allocation4], 4294967280 }
 0x26c   :  { %280 = vsyncpa [#allocation4], 1 }

</bundles_post_ra>
